<compile_context>
chip_gen: v7x
topology: tpu7x:2x2x1
jax: 0.10.0
libtpu: 0.0.40
codegen_flags: <defaults>
</compile_context>

<pallas_src>
import math
import numpy as np

import jax
import jax.numpy as jnp
from jax.experimental import pallas as pl
from jax.experimental.pallas import tpu as pltpu


def _round_up(v, m):
    return ((v + m - 1) // m) * m


def _vmem_limit_bytes():
    """Generation-aware VMEM budget: ~3/4 of per-core capacity, capped at 100 MiB."""
    try:
        cap = int(pltpu.get_tpu_info().vmem_capacity_bytes)
        return min((cap * 3) // 4, 100 * 1024 * 1024)
    except Exception:
        # Conservative fallback (also fits v7x's 64 MiB physical VMEM per core).
        return 48 * 1024 * 1024


# ----------------------------------------------------------------------------
# Fused kernel: batched crop + prefilter + bicubic resize (+ clamp + noise)
# ----------------------------------------------------------------------------

def pallas_resample_cutouts(x, gh_all, gwt_all, cut_size, facs=None, noise=None):
    """x:[N,C,H,W]; gh_all:[cutn,cs_sub,H] bf16; gwt_all:[cutn,W,cs_lane] bf16.

    Returns [cutn, N*C, cut_size, cut_size] float32 where
       out[k, nc] = Gh[k] @ X[nc] @ Gw[k]^T
    and, when facs/noise are given, the clamp(0,1) + facs*noise epilogue is fused in.
    """
    N, C, H, W = map(int, x.shape)
    cutn, cs_sub, _ = map(int, gh_all.shape)
    cs_lane = int(gwt_all.shape[-1])
    NC = N * C
    cs = int(cut_size)
    fuse = facs is not None

    x3 = x.reshape(NC, H, W).astype(jnp.bfloat16)

    def kernel(*refs):
        if fuse:
            gh_ref, gwt_ref, x_ref, facs_ref, noise_ref, o_ref, t_ref = refs
        else:
            gh_ref, gwt_ref, x_ref, o_ref, t_ref = refs
        gh = gh_ref[0]      # (cs_sub, H)   bf16, shared LHS across n
        gwt = gwt_ref[0]    # (W, cs_lane)  bf16, shared RHS across n
        # First GEMM per plane: RHS (the image plane) differs per n, so it cannot be
        # merged without an in-kernel transpose of the intermediate; K=H, N=W already
        # give good MXU occupancy.  Results are staged row-blocked in a persistent
        # bf16 VMEM scratch so the second GEMM can be issued as ONE large matmul.
        for n in range(NC):
            t = jnp.dot(gh, x_ref[n], preferred_element_type=jnp.float32)   # (cs_sub, W)
            t_ref[n * cs_sub:(n + 1) * cs_sub, :] = t.astype(jnp.bfloat16)
        # Second GEMM, batched across NC: M = NC*cs_sub fills the MXU rows.
        big = jnp.dot(t_ref[...], gwt, preferred_element_type=jnp.float32)  # (NC*cs_sub, cs_lane)
        # Free reshape (cs_sub multiple of 8, cs_lane multiple of 128), then slice off
        # the alignment padding in VMEM and store the un-padded result directly.
        res = big.reshape(NC, cs_sub, cs_lane)[:, :cs, :cs]                 # (NC, cs, cs)
        if fuse:
            # clamp_with_grad forward + facs * N(0,1) noise, fused epilogue.
            # TODO(synk): clamp_with_grad has a straight-through backward; forward-only here.
            res = jnp.clip(res, 0.0, 1.0) + facs_ref[0] * noise_ref[0]
        o_ref[0] = res   # TODO(synk): emit bf16 here if downstream tolerates it (halves writeback on v5e)

    in_specs = [
        pl.BlockSpec((1, cs_sub, H), lambda i: (i, 0, 0)),
        pl.BlockSpec((1, W, cs_lane), lambda i: (i, 0, 0)),
        # constant block index -> the full image is DMA'd to VMEM once and reused
        # across all cutn grid steps.
        # TODO(synk): for very large NC*H*W on v7x (64 MiB VMEM/TC) add an NC-tiling
        # outer grid axis instead of holding the whole image resident.
        pl.BlockSpec((NC, H, W), lambda i: (0, 0, 0)),
    ]
    args = [gh_all, gwt_all, x3]
    if fuse:
        in_specs += [
            pl.BlockSpec((1, NC, 1, 1), lambda i: (i, 0, 0, 0)),   # per-(cutout,n,c) factor
            pl.BlockSpec((1, NC, cs, cs), lambda i: (i, 0, 0, 0)),  # gaussian noise
        ]
        args += [facs, noise]

    return pl.pallas_call(
        kernel,
        out_shape=jax.ShapeDtypeStruct((cutn, NC, cs, cs), jnp.float32),
        grid=(cutn,),
        in_specs=in_specs,
        out_specs=pl.BlockSpec((1, NC, cs, cs), lambda i: (i, 0, 0, 0)),
        scratch_shapes=[pltpu.VMEM((NC * cs_sub, W), jnp.bfloat16)],
        compiler_params=pltpu.CompilerParams(
            dimension_semantics=("parallel",),
            vmem_limit_bytes=_vmem_limit_bytes(),
        ),
    )(*args)


# ----------------------------------------------------------------------------
# numpy glue: linear maps equivalent to `resample` (lanczos prefilter + bicubic)
# ----------------------------------------------------------------------------

def _np_lanczos(x, a):
    cond = np.logical_and(-a < x, x < a)
    out = np.where(cond, np.sinc(x) * np.sinc(x / a), 0.0)
    return out / out.sum()


def _np_ramp(ratio, width):
    n = math.ceil(width / ratio + 1)
    out = np.arange(n, dtype=np.float64) * ratio
    return np.concatenate([-out[1:][::-1], out])[1:-1]


def _lanczos_prefilter_matrix(h, dh):
    """[h, h]: reflect-pad + 1-D lanczos conv (identity when not downsampling)."""
    if dh >= h:
        return np.eye(h, dtype=np.float64)
    kern = _np_lanczos(_np_ramp(dh / h, 2), 2)
    K = kern.shape[0]
    p = (K - 1) // 2
    M = np.zeros((h, h), dtype=np.float64)
    for i in range(h):
        for k in range(K):
            src = i + k - p
            if src < 0:
                src = -src
            if src >= h:
                src = 2 * (h - 1) - src
            M[i, src] += kern[k]
    return M


def _bicubic_matrix(h, dh, A=-0.75):
    """[dh, h]: bicubic interpolation, align_corners=True, PyTorch kernel (A=-0.75)."""
    def c1(x):
        return ((A + 2.0) * x - (A + 3.0)) * x * x + 1.0

    def c2(x):
        return (((x - 5.0) * x + 8.0) * x - 4.0) * A

    B = np.zeros((dh, h), dtype=np.float64)
    scale = (h - 1) / (dh - 1) if dh > 1 else 0.0
    for i in range(dh):
        xc = i * scale
        x0 = int(math.floor(xc))
        t = xc - x0
        w = (c2(t + 1.0), c1(t), c1(1.0 - t), c2(2.0 - t))
        for k in range(4):
            idx = min(max(x0 - 1 + k, 0), h - 1)
            B[i, idx] += w[k]
    return B


def build_resample_matrix(size, cut_size, side, offset, pad_rows):
    """[pad_rows, side]: crop [offset:offset+size] -> lanczos prefilter -> bicubic resize.

    Rows >= cut_size are zero padding (sublane/lane alignment for the MXU); the padded
    rows/cols are sliced off INSIDE the kernel before the store.
    """
    M = _bicubic_matrix(size, cut_size) @ _lanczos_prefilter_matrix(size, cut_size)
    G = np.zeros((pad_rows, side), dtype=np.float64)
    G[:cut_size, offset:offset + size] = M
    return G


# ----------------------------------------------------------------------------
# MakeCutoutsGinger (Pallas version)
# ----------------------------------------------------------------------------

class MakeCutoutsGingerPallas:
    def __init__(self, cut_size, cutn, cut_pow, augs=None):
        self.cut_size = cut_size
        print(f'cut size: {self.cut_size}')
        self.cutn = cutn
        self.cut_pow = cut_pow
        self.noise_fac = 0.1
        # TODO(synk): `augs` is an external kornia/torch augmentation pipeline with no
        # Pallas equivalent; identity (None) keeps the clamp->augs->noise chain fused.
        self.augs = augs
        self._identity_augs = augs is None
        # av_pool / max_pool exist in the reference but are unused in forward.

    def set_cut_pow(self, cut_pow):
        self.cut_pow = cut_pow

    def __call__(self, x, *, np_seed=0, jax_key=None):
        N, C, sideY, sideX = map(int, x.shape)
        max_size = min(sideX, sideY)                    # kept for fidelity (unused)
        min_size = min(sideX, sideY, self.cut_size)     # kept for fidelity (unused)
        min_size_width = min(sideX, sideY)
        lower_bound = float(self.cut_size / min_size_width)

        rng = np.random.RandomState(np_seed)            # deterministic size/offset draws
        if jax_key is None:
            jax_key = jax.random.PRNGKey(np_seed)

        cs = self.cut_size
        cs_sub = _round_up(cs, 8)      # sublane-aligned GEMM rows
        cs_lane = _round_up(cs, 128)   # lane-aligned GEMM columns

        gh_list, gw_list = [], []
        for _ in range(self.cutn):
            randsize = float(np.clip(rng.normal(0.8, 0.3), lower_bound, 1.0))
            size_mult = randsize ** self.cut_pow
            size = int(min_size_width * float(np.clip(size_mult, lower_bound, 1.0)))
            size = max(size, 1)
            offsetx = int(rng.randint(0, sideX - size + 1))
            offsety = int(rng.randint(0, sideY - size + 1))
            gh_list.append(build_resample_matrix(size, cs, sideY, offsety, cs_sub))
            gw_list.append(build_resample_matrix(size, cs, sideX, offsetx, cs_lane))

        # NOTE: bf16 Gh/Gw trade ~0.4% relative weight precision for MXU speed.
        gh_all = jnp.asarray(np.stack(gh_list), jnp.bfloat16)                      # [cutn,cs_sub,H]
        gwt_all = jnp.asarray(np.stack(gw_list).transpose(0, 2, 1), jnp.bfloat16)  # [cutn,W,cs_lane]

        NC = N * C
        L = self.cutn * N

        if self._identity_augs:
            k_facs, k_noise = jax.random.split(jax_key)
            if self.noise_fac:
                facs_rows = jax.random.uniform(k_facs, (self.cutn, N), jnp.float32,
                                               0.0, self.noise_fac)
            else:
                facs_rows = jnp.zeros((self.cutn, N), jnp.float32)
            # expand per-(cutout,batch) factor over channels -> (cutn, N*C, 1, 1)
            facs = jnp.broadcast_to(facs_rows[:, :, None, None, None],
                                    (self.cutn, N, C, 1, 1)).reshape(self.cutn, NC, 1, 1)
            noise = jax.random.normal(k_noise, (self.cutn, NC, cs, cs), jnp.float32)
            res = pallas_resample_cutouts(x, gh_all, gwt_all, cs, facs=facs, noise=noise)
            # free reshape: (cutn, N*C, cs, cs) -> (cutn*N, C, cs, cs) == torch.cat(cutouts, 0)
            return res.reshape(L, C, cs, cs)

        # TODO(synk): external augs pipeline has no Pallas equivalent; preserve the
        # reference ordering (clamp -> augs -> +noise) with an XLA fallback.
        res = pallas_resample_cutouts(x, gh_all, gwt_all, cs)
        cutouts = res.reshape(L, C, cs, cs)
        cutouts = jnp.clip(cutouts, 0.0, 1.0)
        cutouts = self.augs(cutouts)
        if self.noise_fac:
            k1, k2 = jax.random.split(jax_key)
            facs = jax.random.uniform(k1, (L, 1, 1, 1), jnp.float32, 0.0, self.noise_fac)
            cutouts = cutouts + facs * jax.random.normal(k2, cutouts.shape, jnp.float32)
        return cutouts


# ----------------------------------------------------------------------------

if __name__ == "__main__":
    key = jax.random.PRNGKey(0)
    kx, knoise = jax.random.split(key)

    # small deterministic example: batch=2, channels=4, 16x16 image (NCHW)
    x = jax.random.uniform(kx, (2, 4, 16, 16), dtype=jnp.float32)

    maker = MakeCutoutsGingerPallas(cut_size=8, cutn=4, cut_pow=1.0, augs=None)
    out = maker(x, np_seed=0, jax_key=knoise)
    out = jax.block_until_ready(out)

    assert out.shape == (4 * 2, 4, 8, 8), out.shape   # [cutn*N, C, cut, cut]
    assert bool(jnp.all(jnp.isfinite(out)))
    print("KERNEL_OK")
</pallas_src>

<mosaic_0001>
module attributes {stable_mosaic.version = 11 : i64} {
  func.func @kernel(%arg0: i32, %arg1: memref<1x8x16xbf16, #tpu.memory_space<vmem>>, %arg2: memref<1x16x128xbf16, #tpu.memory_space<vmem>>, %arg3: memref<8x16x16xbf16, #tpu.memory_space<vmem>>, %arg4: memref<1x8x1x1xf32, #tpu.memory_space<vmem>>, %arg5: memref<1x8x8x8xf32, #tpu.memory_space<vmem>>, %arg6: memref<1x8x8x8xf32, #tpu.memory_space<vmem>>, %arg7: memref<64x16xbf16, #tpu.memory_space<vmem>>) attributes {dimension_semantics = [#tpu.dimension_semantics<parallel>], iteration_bounds = array<i64: 4>, scalar_prefetch = 0 : i64, scratch_operands = 1 : i64, tpu.core_type = #tpu.core_type<tc>, window_params = [{transform_indices = @transform_0, window_bounds = array<i64: 1, 8, 16>}, {transform_indices = @transform_1, window_bounds = array<i64: 1, 16, 128>}, {pipeline_mode = #tpu.pipeline_mode<synchronous>, transform_indices = @transform_2, window_bounds = array<i64: 8, 16, 16>}, {transform_indices = @transform_3, window_bounds = array<i64: 1, 8, 1, 1>}, {transform_indices = @transform_4, window_bounds = array<i64: 1, 8, 8, 8>}, {transform_indices = @transform_5, window_bounds = array<i64: 1, 8, 8, 8>}]} {
    %c0 = arith.constant 0 : index
    %c0_0 = arith.constant 0 : index
    %c0_1 = arith.constant 0 : index
    %0 = vector.load %arg1[%c0, %c0_0, %c0_1] : memref<1x8x16xbf16, #tpu.memory_space<vmem>>, vector<1x8x16xbf16>
    %1 = vector.shape_cast %0 : vector<1x8x16xbf16> to vector<8x16xbf16>
    %c0_2 = arith.constant 0 : index
    %c0_3 = arith.constant 0 : index
    %c0_4 = arith.constant 0 : index
    %2 = vector.load %arg2[%c0_2, %c0_3, %c0_4] : memref<1x16x128xbf16, #tpu.memory_space<vmem>>, vector<1x16x128xbf16>
    %3 = vector.shape_cast %2 : vector<1x16x128xbf16> to vector<16x128xbf16>
    %c0_5 = arith.constant 0 : index
    %c0_6 = arith.constant 0 : index
    %c0_7 = arith.constant 0 : index
    %4 = vector.load %arg3[%c0_5, %c0_6, %c0_7] : memref<8x16x16xbf16, #tpu.memory_space<vmem>>, vector<1x16x16xbf16>
    %5 = vector.shape_cast %4 : vector<1x16x16xbf16> to vector<16x16xbf16>
    %cst = arith.constant dense<0.000000e+00> : vector<8x16xf32>
    %6 = tpu.matmul %1, %5, %cst {dimension_numbers = #tpu.dot_dimension_numbers<[1], [0], [0], [1], [0, 0, 1, 1], [], []>} : vector<8x16xbf16>, vector<16x16xbf16>, vector<8x16xf32> -> vector<8x16xf32>
    %7 = arith.truncf %6 : vector<8x16xf32> to vector<8x16xbf16>
    %c0_8 = arith.constant 0 : index
    %c0_9 = arith.constant 0 : index
    %8 = vector.load %arg7[%c0_8, %c0_9] : memref<64x16xbf16, #tpu.memory_space<vmem>>, vector<8x16xbf16>
    tpu.vector_store %arg7[%c0_8, %c0_9], %7 {strides = array<i32>} : memref<64x16xbf16, #tpu.memory_space<vmem>>, vector<8x16xbf16>,
    %c1 = arith.constant 1 : index
    %c0_10 = arith.constant 0 : index
    %c0_11 = arith.constant 0 : index
    %9 = vector.load %arg3[%c1, %c0_10, %c0_11] : memref<8x16x16xbf16, #tpu.memory_space<vmem>>, vector<1x16x16xbf16>
    %10 = vector.shape_cast %9 : vector<1x16x16xbf16> to vector<16x16xbf16>
    %cst_12 = arith.constant dense<0.000000e+00> : vector<8x16xf32>
    %11 = tpu.matmul %1, %10, %cst_12 {dimension_numbers = #tpu.dot_dimension_numbers<[1], [0], [0], [1], [0, 0, 1, 1], [], []>} : vector<8x16xbf16>, vector<16x16xbf16>, vector<8x16xf32> -> vector<8x16xf32>
    %12 = arith.truncf %11 : vector<8x16xf32> to vector<8x16xbf16>
    %c8 = arith.constant 8 : index
    %c0_13 = arith.constant 0 : index
    %13 = vector.load %arg7[%c8, %c0_13] : memref<64x16xbf16, #tpu.memory_space<vmem>>, vector<8x16xbf16>
    tpu.vector_store %arg7[%c8, %c0_13], %12 {strides = array<i32>} : memref<64x16xbf16, #tpu.memory_space<vmem>>, vector<8x16xbf16>,
    %c2 = arith.constant 2 : index
    %c0_14 = arith.constant 0 : index
    %c0_15 = arith.constant 0 : index
    %14 = vector.load %arg3[%c2, %c0_14, %c0_15] : memref<8x16x16xbf16, #tpu.memory_space<vmem>>, vector<1x16x16xbf16>
    %15 = vector.shape_cast %14 : vector<1x16x16xbf16> to vector<16x16xbf16>
    %cst_16 = arith.constant dense<0.000000e+00> : vector<8x16xf32>
    %16 = tpu.matmul %1, %15, %cst_16 {dimension_numbers = #tpu.dot_dimension_numbers<[1], [0], [0], [1], [0, 0, 1, 1], [], []>} : vector<8x16xbf16>, vector<16x16xbf16>, vector<8x16xf32> -> vector<8x16xf32>
    %17 = arith.truncf %16 : vector<8x16xf32> to vector<8x16xbf16>
    %c16 = arith.constant 16 : index
    %c0_17 = arith.constant 0 : index
    %18 = vector.load %arg7[%c16, %c0_17] : memref<64x16xbf16, #tpu.memory_space<vmem>>, vector<8x16xbf16>
    tpu.vector_store %arg7[%c16, %c0_17], %17 {strides = array<i32>} : memref<64x16xbf16, #tpu.memory_space<vmem>>, vector<8x16xbf16>,
    %c3 = arith.constant 3 : index
    %c0_18 = arith.constant 0 : index
    %c0_19 = arith.constant 0 : index
    %19 = vector.load %arg3[%c3, %c0_18, %c0_19] : memref<8x16x16xbf16, #tpu.memory_space<vmem>>, vector<1x16x16xbf16>
    %20 = vector.shape_cast %19 : vector<1x16x16xbf16> to vector<16x16xbf16>
    %cst_20 = arith.constant dense<0.000000e+00> : vector<8x16xf32>
    %21 = tpu.matmul %1, %20, %cst_20 {dimension_numbers = #tpu.dot_dimension_numbers<[1], [0], [0], [1], [0, 0, 1, 1], [], []>} : vector<8x16xbf16>, vector<16x16xbf16>, vector<8x16xf32> -> vector<8x16xf32>
    %22 = arith.truncf %21 : vector<8x16xf32> to vector<8x16xbf16>
    %c24 = arith.constant 24 : index
    %c0_21 = arith.constant 0 : index
    %23 = vector.load %arg7[%c24, %c0_21] : memref<64x16xbf16, #tpu.memory_space<vmem>>, vector<8x16xbf16>
    tpu.vector_store %arg7[%c24, %c0_21], %22 {strides = array<i32>} : memref<64x16xbf16, #tpu.memory_space<vmem>>, vector<8x16xbf16>,
    %c4 = arith.constant 4 : index
    %c0_22 = arith.constant 0 : index
    %c0_23 = arith.constant 0 : index
    %24 = vector.load %arg3[%c4, %c0_22, %c0_23] : memref<8x16x16xbf16, #tpu.memory_space<vmem>>, vector<1x16x16xbf16>
    %25 = vector.shape_cast %24 : vector<1x16x16xbf16> to vector<16x16xbf16>
    %cst_24 = arith.constant dense<0.000000e+00> : vector<8x16xf32>
    %26 = tpu.matmul %1, %25, %cst_24 {dimension_numbers = #tpu.dot_dimension_numbers<[1], [0], [0], [1], [0, 0, 1, 1], [], []>} : vector<8x16xbf16>, vector<16x16xbf16>, vector<8x16xf32> -> vector<8x16xf32>
    %27 = arith.truncf %26 : vector<8x16xf32> to vector<8x16xbf16>
    %c32 = arith.constant 32 : index
    %c0_25 = arith.constant 0 : index
    %28 = vector.load %arg7[%c32, %c0_25] : memref<64x16xbf16, #tpu.memory_space<vmem>>, vector<8x16xbf16>
    tpu.vector_store %arg7[%c32, %c0_25], %27 {strides = array<i32>} : memref<64x16xbf16, #tpu.memory_space<vmem>>, vector<8x16xbf16>,
    %c5 = arith.constant 5 : index
    %c0_26 = arith.constant 0 : index
    %c0_27 = arith.constant 0 : index
    %29 = vector.load %arg3[%c5, %c0_26, %c0_27] : memref<8x16x16xbf16, #tpu.memory_space<vmem>>, vector<1x16x16xbf16>
    %30 = vector.shape_cast %29 : vector<1x16x16xbf16> to vector<16x16xbf16>
    %cst_28 = arith.constant dense<0.000000e+00> : vector<8x16xf32>
    %31 = tpu.matmul %1, %30, %cst_28 {dimension_numbers = #tpu.dot_dimension_numbers<[1], [0], [0], [1], [0, 0, 1, 1], [], []>} : vector<8x16xbf16>, vector<16x16xbf16>, vector<8x16xf32> -> vector<8x16xf32>
    %32 = arith.truncf %31 : vector<8x16xf32> to vector<8x16xbf16>
    %c40 = arith.constant 40 : index
    %c0_29 = arith.constant 0 : index
    %33 = vector.load %arg7[%c40, %c0_29] : memref<64x16xbf16, #tpu.memory_space<vmem>>, vector<8x16xbf16>
    tpu.vector_store %arg7[%c40, %c0_29], %32 {strides = array<i32>} : memref<64x16xbf16, #tpu.memory_space<vmem>>, vector<8x16xbf16>,
    %c6 = arith.constant 6 : index
    %c0_30 = arith.constant 0 : index
    %c0_31 = arith.constant 0 : index
    %34 = vector.load %arg3[%c6, %c0_30, %c0_31] : memref<8x16x16xbf16, #tpu.memory_space<vmem>>, vector<1x16x16xbf16>
    %35 = vector.shape_cast %34 : vector<1x16x16xbf16> to vector<16x16xbf16>
    %cst_32 = arith.constant dense<0.000000e+00> : vector<8x16xf32>
    %36 = tpu.matmul %1, %35, %cst_32 {dimension_numbers = #tpu.dot_dimension_numbers<[1], [0], [0], [1], [0, 0, 1, 1], [], []>} : vector<8x16xbf16>, vector<16x16xbf16>, vector<8x16xf32> -> vector<8x16xf32>
    %37 = arith.truncf %36 : vector<8x16xf32> to vector<8x16xbf16>
    %c48 = arith.constant 48 : index
    %c0_33 = arith.constant 0 : index
    %38 = vector.load %arg7[%c48, %c0_33] : memref<64x16xbf16, #tpu.memory_space<vmem>>, vector<8x16xbf16>
    tpu.vector_store %arg7[%c48, %c0_33], %37 {strides = array<i32>} : memref<64x16xbf16, #tpu.memory_space<vmem>>, vector<8x16xbf16>,
    %c7 = arith.constant 7 : index
    %c0_34 = arith.constant 0 : index
    %c0_35 = arith.constant 0 : index
    %39 = vector.load %arg3[%c7, %c0_34, %c0_35] : memref<8x16x16xbf16, #tpu.memory_space<vmem>>, vector<1x16x16xbf16>
    %40 = vector.shape_cast %39 : vector<1x16x16xbf16> to vector<16x16xbf16>
    %cst_36 = arith.constant dense<0.000000e+00> : vector<8x16xf32>
    %41 = tpu.matmul %1, %40, %cst_36 {dimension_numbers = #tpu.dot_dimension_numbers<[1], [0], [0], [1], [0, 0, 1, 1], [], []>} : vector<8x16xbf16>, vector<16x16xbf16>, vector<8x16xf32> -> vector<8x16xf32>
    %42 = arith.truncf %41 : vector<8x16xf32> to vector<8x16xbf16>
    %c56 = arith.constant 56 : index
    %c0_37 = arith.constant 0 : index
    %43 = vector.load %arg7[%c56, %c0_37] : memref<64x16xbf16, #tpu.memory_space<vmem>>, vector<8x16xbf16>
    tpu.vector_store %arg7[%c56, %c0_37], %42 {strides = array<i32>} : memref<64x16xbf16, #tpu.memory_space<vmem>>, vector<8x16xbf16>,
    %c0_38 = arith.constant 0 : index
    %c0_39 = arith.constant 0 : index
    %44 = vector.load %arg7[%c0_38, %c0_39] : memref<64x16xbf16, #tpu.memory_space<vmem>>, vector<64x16xbf16>
    %cst_40 = arith.constant dense<0.000000e+00> : vector<64x128xf32>
    %45 = tpu.matmul %44, %3, %cst_40 {dimension_numbers = #tpu.dot_dimension_numbers<[1], [0], [0], [1], [0, 0, 1, 1], [], []>} : vector<64x16xbf16>, vector<16x128xbf16>, vector<64x128xf32> -> vector<64x128xf32>
    %46 = vector.shape_cast %45 : vector<64x128xf32> to vector<8x8x128xf32>
    %47 = vector.extract_strided_slice %46 {offsets = [0, 0, 0], sizes = [8, 8, 8], strides = [1, 1, 1]} : vector<8x8x128xf32> to vector<8x8x8xf32>
    %cst_41 = arith.constant 0.000000e+00 : f32
    %cst_42 = arith.constant 1.000000e+00 : f32
    %48 = vector.broadcast %cst_41 : f32 to vector<8x8x8xf32>
    %49 = arith.maximumf %48, %47 : vector<8x8x8xf32>
    %50 = vector.broadcast %cst_42 : f32 to vector<8x8x8xf32>
    %51 = arith.minimumf %50, %49 : vector<8x8x8xf32>
    %c0_43 = arith.constant 0 : index
    %c0_44 = arith.constant 0 : index
    %c0_45 = arith.constant 0 : index
    %c0_46 = arith.constant 0 : index
    %52 = vector.load %arg4[%c0_43, %c0_44, %c0_45, %c0_46] : memref<1x8x1x1xf32, #tpu.memory_space<vmem>>, vector<1x8x1x1xf32>
    %53 = vector.shape_cast %52 : vector<1x8x1x1xf32> to vector<8x1x1xf32>
    %c0_47 = arith.constant 0 : index
    %c0_48 = arith.constant 0 : index
    %c0_49 = arith.constant 0 : index
    %c0_50 = arith.constant 0 : index
    %54 = vector.load %arg5[%c0_47, %c0_48, %c0_49, %c0_50] : memref<1x8x8x8xf32, #tpu.memory_space<vmem>>, vector<1x8x8x8xf32>
    %55 = vector.shape_cast %54 : vector<1x8x8x8xf32> to vector<8x8x8xf32>
    %56 = vector.broadcast %53 : vector<8x1x1xf32> to vector<8x8x8xf32>
    %57 = arith.mulf %56, %55 : vector<8x8x8xf32>
    %58 = arith.addf %51, %57 : vector<8x8x8xf32>
    %c0_51 = arith.constant 0 : index
    %c0_52 = arith.constant 0 : index
    %c0_53 = arith.constant 0 : index
    %c0_54 = arith.constant 0 : index
    %59 = vector.load %arg6[%c0_51, %c0_52, %c0_53, %c0_54] : memref<1x8x8x8xf32, #tpu.memory_space<vmem>>, vector<1x8x8x8xf32>
    %60 = vector.shape_cast %59 : vector<1x8x8x8xf32> to vector<8x8x8xf32>
    %61 = vector.shape_cast %58 : vector<8x8x8xf32> to vector<1x8x8x8xf32>
    tpu.vector_store %arg6[%c0_51, %c0_52, %c0_53, %c0_54], %61 {strides = array<i32>} : memref<1x8x8x8xf32, #tpu.memory_space<vmem>>, vector<1x8x8x8xf32>,
    return
  }
  func.func @transform_0(%arg0: i32) -> (i32, i32, i32) {
    %c0_i32 = arith.constant 0 : i32
    %c0_i32_0 = arith.constant 0 : i32
    %c0_i32_1 = arith.constant 0 : i32
    return %arg0, %c0_i32, %c0_i32_0 : i32, i32, i32
  }
  func.func @transform_1(%arg0: i32) -> (i32, i32, i32) {
    %c0_i32 = arith.constant 0 : i32
    %c0_i32_0 = arith.constant 0 : i32
    %c0_i32_1 = arith.constant 0 : i32
    return %arg0, %c0_i32, %c0_i32_0 : i32, i32, i32
  }
  func.func @transform_2(%arg0: i32) -> (i32, i32, i32) {
    %c0_i32 = arith.constant 0 : i32
    %c0_i32_0 = arith.constant 0 : i32
    %c0_i32_1 = arith.constant 0 : i32
    %c0_i32_2 = arith.constant 0 : i32
    return %c0_i32, %c0_i32_0, %c0_i32_1 : i32, i32, i32
  }
  func.func @transform_3(%arg0: i32) -> (i32, i32, i32, i32) {
    %c0_i32 = arith.constant 0 : i32
    %c0_i32_0 = arith.constant 0 : i32
    %c0_i32_1 = arith.constant 0 : i32
    %c0_i32_2 = arith.constant 0 : i32
    return %arg0, %c0_i32, %c0_i32_0, %c0_i32_1 : i32, i32, i32, i32
  }
  func.func @transform_4(%arg0: i32) -> (i32, i32, i32, i32) {
    %c0_i32 = arith.constant 0 : i32
    %c0_i32_0 = arith.constant 0 : i32
    %c0_i32_1 = arith.constant 0 : i32
    %c0_i32_2 = arith.constant 0 : i32
    return %arg0, %c0_i32, %c0_i32_0, %c0_i32_1 : i32, i32, i32, i32
  }
  func.func @transform_5(%arg0: i32) -> (i32, i32, i32, i32) {
    %c0_i32 = arith.constant 0 : i32
    %c0_i32_0 = arith.constant 0 : i32
    %c0_i32_1 = arith.constant 0 : i32
    %c0_i32_2 = arith.constant 0 : i32
    return %arg0, %c0_i32, %c0_i32_0, %c0_i32_1 : i32, i32, i32, i32
  }
}

</mosaic_0001>

<bundles_post_ra>
// kernel: tpu_custom_call.1
= control target key start
LH: loop header
LB: loop body
LE: loop exit
PB: predicated region body
PF: predicated region fallthrough
CT: control target
= control target key end

     0   :  { %s1850_s0 = inlined_call_operand.hbm [shape: bf16[4,8,16], index: 0, kind: input, shape index: {}]   ;;  %s1851_s1 = inlined_call_operand.vmem [shape: bf16[4,16,128], index: 1, kind: input, shape index: {}]   ;;  %s1852_s2 = inlined_call_operand.hbm [shape: bf16[8,16,16], index: 2, kind: input, shape index: {}]   ;;  %s1853_s3 = inlined_call_operand.vmem [shape: f32[4,8,1,1], index: 3, kind: input, shape index: {}]   ;;  %s1854_s4 = inlined_call_operand.hbm [shape: f32[4,8,8,8], index: 4, kind: input, shape index: {}]   ;;  %s1855_s5 = inlined_call_operand.hbm [shape: f32[4,8,8,8], index: 5, kind: output, shape index: {}]  }
   0x1   :  { %1860 = sst [smem:[#allocation14_spill]] %s1850_s0 }
   0x2   :  { %1861 = sst [smem:[#allocation15_spill]] %s1854_s4 }
   0x3   :  { %10 = vsyncpa [#allocation4], 0 }
   0x4   :  { %12 = vsyncpa [#allocation4 + $0x1], 0 }
   0x5   :  { %13 = vsyncpa [#allocation7], 0 }
   0x6   :  { %14 = vsyncpa [#allocation5], 0 }
   0x7   :  { %16 = vsyncpa [#allocation5 + $0x1], 0  ;;  %s1537_s18 = smov 0   ;;  %s1539_s19 = smov 0  }
   0x8   :  { %s1541_s20 = smov 0   ;;  %s1543_s21 = smov 0  }
   0x9 LB: > { %s1558_s22 = sadd.s32 1, %s1492_s21   ;;  %s29_s23 = sadd.s32 1, %s1488_s20  ;;  %s1492_s21 = sphi %s1543_s21, %s1879_s21   ;;  %s1488_s20 = sphi %s1541_s20, %s1878_s20   ;;  %s1484_s19 = sphi %s1539_s19, %s1877_s19   ;;  %s1480_s18 = sphi %s1537_s18, %s1876_s18  }
   0xa   : > { %s26_s24 = ssub.s32 %s1492_s21, %s1558_s22  ;;  %p36_p0 = scmp.ne.s32.totalorder %s1488_s20, %s1484_s19 }
   0xb   : > { %p27_p1 = scmp.eq.s32.totalorder %s26_s24, 0  ;;  %p37_p2 = scmp.eq.s32.totalorder %s1492_s21, 0 }
   0xc   : > { %p1274_p3 = scmp.lt.s32.totalorder %s1492_s21, 4  ;;  %s204_s26 = sand.u32 1, %s1492_s21  }
   0xd   : > { %s1568_s25 = scalar_select %p27_p1, %s1488_s20, %s29_s23  }
   0xe   : > { %p38_p4 = por %p37_p2, %p36_p0  ;;  %s206_s27 = sand.u32 1, %s1488_s20  }
   0xf   : > { %s1119_s28 = sshll.u32 %s206_s27, 2  ;;  %s1120_s29 = sshll.u32 %s1492_s21, 6 }
  0x10   : > { %s1862_s0 = sld [smem:[#allocation14_spill]]  ;;  %s208_s8 = scalar_lea.vmem [#allocation3], %s1119_s28 }
  0x11   : > { %s215_s9 = sshll.u32 %s208_s8, 4  ;;  %p1581_p5 = pnand %p1274_p3, %p38_p4  ;;  %s1585_s9 = int_to_ptr.vmem [resolvable:$true] %s215_s9 }
  0x12   : > { %s1587_s11 = sshll.u32 %s206_s27, 6  ;;  %s1589_s12 = scalar_lea.sflag [#allocation4], %s204_s26 }
  0x13   : > { %p1332_p7 = pneg %p1581_p5 }
  0x16   : > { %s1579_s7 = scalar_lea.hbm %s1862_s0, %s1120_s29  ;;  %s1335_s16 = scalar_lea.hbm %s1862_s0, 256 }
  0x17   : > { %s1330_s13 = scalar_lea.hbm %s1579_s7, 64  ;;  %p1336_p10 = scmp.lt.u32.totalorder %s1579_s7, %s1862_s0 }
  0x18   : > { %p1331_p6 = scmp.ne.s32.totalorder %s1579_s7, %s1330_s13  ;;  %p1337_p11 = scmp.lt.u32.totalorder %s1335_s16, %s1330_s13 }
  0x19   : > { %p1339_p13 = scmp.lt.u32.totalorder %s1330_s13, %s1579_s7 }
  0x1a   : > { %p1333_p8 = pnand %p1332_p7, %p1331_p6  ;;  %p1338_p12 = por %p1337_p11, %p1336_p10 }
  0x1c   : > { %p1334_p9 = pneg %p1333_p8  ;;  %p1340_p1 = por %p1339_p13, %p1338_p12 }
  0x1e   : > { %p1341_p2 = pnand %p1340_p1, %p1334_p9 }
  0x20   : > { %1344 = shalt.err (!%p1341_p2)
}
  0x21   : > { %s1345_s24 = scalar_lea.vmem %s1585_s9, 64  ;;  %s1494_s26 = smov [#allocation3]  }
  0x22   : > { %p1346_p3 = scmp.ne.s32.totalorder %s1585_s9, %s1345_s24  ;;  %s1350_s27 = sshll.u32 %s1494_s26, 4  ;;  %s1351_s27 = int_to_ptr.vmem [resolvable:$false] %s1350_s27 }
  0x23   : > { %s1352_s28 = scalar_lea.vmem %s1351_s27, 128  ;;  %p1353_p8 = scmp.lt.s32.totalorder %s1585_s9, %s1351_s27 }
  0x24   : > { %p1348_p4 = pnand %p1346_p3, %p1332_p7  ;;  %p1354_p10 = scmp.lt.s32.totalorder %s1352_s28, %s1345_s24 }
  0x26   : > { %p1349_p6 = pneg %p1348_p4  ;;  %p1355_p11 = por %p1354_p10, %p1353_p8 }
  0x28   : > { %p1356_p12 = pnand %p1355_p11, %p1349_p6 }
  0x2a   : > { %1359 = shalt.err (!%p1356_p12)
}
  0x2b   : > { %1265 = dma.hbm_to_vmem [thread:$0]  (!%p1581_p5), %s1579_s7, 64, %s1585_s9, %s1589_s12  }
  0x2c   : > { %s241_s29 = scalar_lea.vmem [#allocation8], %s1587_s11  ;;  %s1621_s6 = sadd.s32 4294967295, %s1492_s21  }
  0x2d   : > { %s248_s30 = sshll.u32 %s241_s29, 4  ;;  %s1115_s8 = sadd.s32 4294967294, %s1492_s21   ;;  %s1618_s30 = int_to_ptr.vmem [resolvable:$true] %s248_s30 }
  0x2e   : > { %p42_p9 = scmp.ne.s32.totalorder %s1484_s19, %s1480_s18  ;;  %p1856_p13 = scmp.eq.s32.totalorder %s1621_s6, 0 }
  0x2f   : > { %p165_p1 = scmp.eq.s32.totalorder %s1621_s6, 3  ;;  %p171_p2 = scmp.eq.s32.totalorder %s1115_s8, 3 }
  0x30   : > { %p1630_p3 = por %p1856_p13, %p42_p9  ;;  %p1116_p4 = scmp.ge.s32.totalorder %s1492_s21, 1 }
  0x31   : > { %p1638_p6 = por %p165_p1, %p36_p0  ;;  %p1642_p8 = por %p171_p2, %p42_p9 }
  0x32   : > { %s1864_s7 = scalar_select %p1630_p3, 1, 0 }
  0x33   : > { %s1865_s9 = scalar_select %p1638_p6, 1, 0 }
  0x34   : > { %s1866_s11 = scalar_select %p1642_p8, 1, 0 }
  0x35   : > { %p178_p10 = scmp.lt.s32.totalorder %s1492_s21, 5  ;;  %s1495_s14 = smov [#allocation6]  }
  0x36   : > { %s190_s15 = sshll.u32 %s1495_s14, 4  ;;  %s1166_s16 = sshll.u32 %s1492_s21, 10  ;;  %s1651_s15 = int_to_ptr.vmem [resolvable:$true] %s190_s15 }
  0x37   : > { %p1647_p11 = pnand %p1116_p4, %p178_p10  ;;  %s1868_s4 = sld [smem:[#allocation15_spill]] }
  0x39   : > { %s1867_s13 = scalar_select %p1647_p11, 1, 0 }
  0x3a   : > { %p1258_p12 = pneg %p1647_p11 }
  0x3c   : > { %p1663_p0 = pnand %p1258_p12, %p1856_p13 }
  0x3d   : > { %s1659_s24 = scalar_lea.hbm %s1868_s4, %s1166_s16  ;;  %s1365_s8 = scalar_lea.hbm %s1868_s4, 4096 }
  0x3e   : > { %s1360_s27 = scalar_lea.hbm %s1659_s24, 1024  ;;  %p1366_p4 = scmp.lt.u32.totalorder %s1659_s24, %s1868_s4 }
  0x3f   : > { %p1361_p9 = scmp.ne.s32.totalorder %s1659_s24, %s1360_s27  ;;  %p1367_p10 = scmp.lt.u32.totalorder %s1365_s8, %s1360_s27 }
  0x40   : > { %p1369_p12 = scmp.lt.u32.totalorder %s1360_s27, %s1659_s24 }
  0x41   : > { %p1363_p1 = pnand %p1361_p9, %p1332_p7  ;;  %p1368_p8 = por %p1367_p10, %p1366_p4 }
  0x43   : > { %p1364_p2 = pneg %p1363_p1  ;;  %p1370_p13 = por %p1369_p12, %p1368_p8 }
  0x45   : > { %p1371_p6 = pnand %p1370_p13, %p1364_p2 }
  0x47   : > { %1374 = shalt.err (!%p1371_p6)
}
  0x48   : > { %s1375_s17 = scalar_lea.vmem %s1618_s30, 1024  ;;  %s1496_s23 = smov [#allocation8]  }
  0x49   : > { %p1376_p9 = scmp.ne.s32.totalorder %s1618_s30, %s1375_s17  ;;  %s1380_s28 = sshll.u32 %s1496_s23, 4  ;;  %s1381_s28 = int_to_ptr.vmem [resolvable:$false] %s1380_s28 }
  0x4a   : > { %s1382_s29 = scalar_lea.vmem %s1381_s28, 2048  ;;  %p1383_p11 = scmp.lt.s32.totalorder %s1618_s30, %s1381_s28 }
  0x4b   : > { %p1378_p1 = pnand %p1376_p9, %p1332_p7  ;;  %p1384_p4 = scmp.lt.s32.totalorder %s1382_s29, %s1375_s17 }
  0x4d   : > { %p1379_p3 = pneg %p1378_p1  ;;  %p1385_p10 = por %p1384_p4, %p1383_p11 }
  0x4f   : > { %p1386_p8 = pnand %p1385_p10, %p1379_p3 }
  0x51   : > { %1389 = shalt.err (!%p1386_p8)
}
  0x52   : > { %s1497_s27 = smov 128   ;;  %s1498_s8 = smov 8  }
  0x53   : > { %1268 = dma.hbm_to_vmem [thread:$0]  (!%p1581_p5), %s1659_s24, 1024, %s1618_s30, %s1589_s12, %s1497_s27, %s1497_s27, %s1498_s8  }
  0x54   : > { %s1390_s23 = scalar_lea.hbm %s1852_s2, 1024  ;;  %p1392_p13 = pneg %p1663_p0 }
  0x55   : > { %p1391_p7 = scmp.ne.s32.totalorder %s1852_s2, %s1390_s23  ;;  %p1397_p11 = scmp.lt.u32.totalorder %s1390_s23, %s1852_s2 }
  0x57   : > { %p1393_p3 = pnand %p1392_p13, %p1391_p7 }
  0x59   : > { %p1394_p6 = pneg %p1393_p3 }
  0x5b   : > { %p1399_p2 = pnand %p1397_p11, %p1394_p6 }
  0x5d   : > { %1402 = shalt.err (!%p1399_p2)
}
  0x5e   : > { %s1403_s10 = scalar_lea.vmem %s1651_s15, 1024  ;;  %p1411_p1 = scmp.lt.s32.totalorder %s1651_s15, %s1651_s15 }
  0x5f   : > { %p1404_p5 = scmp.ne.s32.totalorder %s1651_s15, %s1403_s10  ;;  %p1412_p4 = scmp.lt.s32.totalorder %s1403_s10, %s1403_s10 }
  0x61   : > { %p1406_p12 = pnand %p1404_p5, %p1392_p13  ;;  %p1413_p10 = por %p1412_p4, %p1411_p1 }
  0x63   : > { %p1407_p9 = pneg %p1406_p12 }
  0x65   : > { %p1414_p8 = pnand %p1413_p10, %p1407_p9 }
  0x67   : > { %1417 = shalt.err (!%p1414_p8)
}
  0x68   : > { %s1499_s0 = smov 64   ;;  %s1500_s4 = smov 4  }
  0x69   : > { %1261 = dma.hbm_to_vmem [thread:$0]  (!%p1663_p0), %s1852_s2, 1024, %s1651_s15, [#allocation7], %s1499_s0, %s1499_s0, %s1500_s4  }
  0x6a   : > { %p1870_p7 = scmp.ne.s32.totalorder %s1867_s13, 0 }
  0x6b   : > { %s262_s24 = sand.u32 (!%p1870_p7), 1, %s1621_s6   ;;  %s1716_s29 = sand.u32 (!%p1870_p7), 1, %s1484_s19  }
  0x6c   : > { %260 = sbr.rel (%p1870_p7) target bundleno = 620 (0x26c), region = 40  ;;  %s1125_s27 = sshll.u32 (!%p1870_p7), %s1716_s29, 2 }
  0x6d   : > { %s263_s8 = scalar_lea.sflag (!%p1870_p7), [#allocation4], %s262_s24  ;;  %s266_s14 = scalar_lea.vmem (!%p1870_p7), [#allocation3], %s1125_s27 }
  0x6e   : > { %p1871_p13 = scmp.ne.s32.totalorder (!%p1870_p7), %s1864_s7, 0 }
  0x73   : > { %1463 = dma.done.wait (%p1871_p13), %s263_s8, 64  }
  0x74   : > { %1465 = vsyncadd (%p1871_p13), %s263_s8, 4294967232  ;;  %p1872_p0 = scmp.eq.s32.totalorder %s1621_s6, 0 }
  0x76   : > { %1467 = dma.done.wait (%p1872_p0), [#allocation7], 1024   ;;  %p1873_p3 = pmov %p1872_p0 }
  0x77   : > { %s1127_s13 = sshll.u32 %s1716_s29, 6 }
  0x78   : > { %1469 = vsyncadd (%p1873_p3), [#allocation7], 4294966272  ;;  %s1730_s15 = scalar_lea.vmem [#allocation8], %s1127_s13 }
  0x79   : > { %1471 = dma.done.wait (%p1871_p13), %s263_s8, 1024  }
  0x7a   : > { %1473 = vsyncadd (%p1871_p13), %s263_s8, 4294966272  ;;  %v1501_v0 = vmov 0.0   ;;  %vm1502_vm0 = vmmov 0   ;;  %v1321_v1 = vld [vmem:[#allocation6] sm:$0xff]   ;;  %v330_v2 = vld [vmem:[%s266_s14] sm:$0xf] }
  0x7b   : > { %1190 = vmatprep.subr.bf16.mxu1 %v1501_v0  ;;  %1192 = vmatprep.mubr.msk.bf16.mxu1 %vm1502_vm0, %v1501_v0  ;;  %vm341_vm1 = vcmask 130048   ;;  %v1322_v3 = vld [vmem:[#allocation6 + $0x8] sm:$0xff]   ;;  %v1324_v4 = vld [vmem:[#allocation6 + $0x10] sm:$0xff]   ;;  %v1326_v5 = vld [vmem:[#allocation6 + $0x20] sm:$0xff]   ;;  %p320_p6 = scmp.lt.s32.totalorder %s1621_s6, 3  ;;  %v1503_v13 = vmov 0  }
  0x7c   : > { %1202 = vmatprep.subr.bf16.mxu0 %v1501_v0  ;;  %1204 = vmatprep.mubr.msk.bf16.mxu0 %vm1502_vm0, %v1501_v0  ;;  %v1323_v6 = vld [vmem:[#allocation6 + $0x18] sm:$0xff]   ;;  %v1328_v7 = vld [vmem:[#allocation6 + $0x30] sm:$0xff]   ;;  %v1325_v8 = vld [vmem:[#allocation6 + $0x28] sm:$0xff]   ;;  %vm386_vm2 = vcmask 125952   ;;  %vm441_vm3 = vcmask 130052   ;;  %vm965_vm4 = vcmask 64512  }
  0x7d   : > { %1191 = vmatpush3.bf16.msra.mxu1 %v1321_v1  ;;  %1203 = vmatpush3.bf16.msra.mxu0 %v1324_v4  ;;  %v1327_v9 = vld [vmem:[#allocation6 + $0x38] sm:$0xff]   ;;  %s321_s7 = scalar_select %p320_p6, %s1621_s6, 3 }
  0x7e   : > { %1196 = vmatprep.subr.bf16.mxu1 %v1501_v0  ;;  %1214 = vmatprep.subr.bf16.mxu0 %v1501_v0  ;;  %s1778_s4 = scalar_lea.vmem [#allocation9], %s1127_s13  ;;  %s1168_s12 = sshll.u32 %s1621_s6, 10 }
  0x7f   : > { %s1167_s26 = sshll.u32 %s321_s7, 3  ;;  %1320 = vset.pattern.permute.xlu1 %v1503_v13  ;;  %1319 = vset.pattern.permute.xlu0 %v1503_v13  ;;  %v870_v13 = vld [vmem:[%s1730_s15 + $0x8] sm:$0xff]  ;;  %s988_s30 = sshll.u32 %s1778_s4, 4  ;;  %s1801_s30 = int_to_ptr.vmem [resolvable:$true] %s988_s30 }
  0x80   : > { %1193 = vmatmul.mubr.msk.bf16.vlgmr.msra.gmra.mrb[0].mxu1 %vm341_vm1, %v330_v2  ;;  %1205 = vmatmul.mubr.msk.bf16.vlgmr.msra.gmra.mrb[0].mxu0 %vm341_vm1, %v330_v2  ;;  %s324_s17 = scalar_lea.vmem %s1851_s1, %s1167_s26  ;;  %s328_s0 = scalar_lea.vmem %s1853_s3, %s1167_s26 }
  0x81   : > { %1197 = vmatpush3.bf16.msra.mxu1 %v1322_v3  ;;  %1198 = vmatprep.mubr.msk.bf16.mxu1 %vm1502_vm0, %v1501_v0  ;;  %v1329_v10 = vld [vmem:[%s324_s17] sm:$0xff]   ;;  %s1799_s8 = scalar_lea.hbm %s1855_s5, %s1168_s12  ;;  %s975_s6 = scalar_lea.sflag [#allocation5], %s1716_s29 }
  0x82   : > { %1208 = vmatprep.subr.bf16.mxu1 %v1501_v0  ;;  %1215 = vmatpush3.bf16.msra.mxu0 %v1326_v5  ;;  %v1155_v11 = vld [vmem:[%s328_s0 + $0x2] ss:$0 sm:$0xff]  ;;  %v1153_v12 = vld [vmem:[%s328_s0] ss:$0 sm:$0xff]  ;;  %v1156_v14 = vld [vmem:[%s328_s0 + $0x3] ss:$0 sm:$0xff] }
  0x83   : > { %1216 = vmatprep.mubr.msk.bf16.mxu0 %vm1502_vm0, %v1501_v0  ;;  %1226 = vmatprep.subr.bf16.mxu0 %v1501_v0  ;;  %v1154_v15 = vld [vmem:[%s328_s0 + $0x1] ss:$0 sm:$0xff]  ;;  %v1158_v16 = vld [vmem:[%s328_s0 + $0x5] ss:$0 sm:$0xff]  ;;  %v1157_v17 = vld [vmem:[%s328_s0 + $0x4] ss:$0 sm:$0xff] }
  0x84   : > { %926 = vperm.xlu1 %1320, %v1155_v11   ;;  %918 = vperm.xlu0 %1319, %v1153_v12   ;;  %v1160_v18 = vld [vmem:[%s328_s0 + $0x7] ss:$0 sm:$0xff]  ;;  %v1159_v19 = vld [vmem:[%s328_s0 + $0x6] ss:$0 sm:$0xff]  ;;  %s1418_s14 = scalar_lea.vmem %s1801_s30, 1024  ;;  %p1874_p2 = scmp.ne.s32.totalorder %s1865_s9, 0 }
  0x85   : > { %p1419_p11 = scmp.ne.s32.totalorder %s1801_s30, %s1418_s14  ;;  %s1504_s13 = smov [#allocation9]  }
  0x87   : > { %p1420_p5 = pnand %p1419_p11, %p1874_p2 }
  0x88   : > { %1199 = vmatmul.mubr.msk.bf16.vlgmr.msra.gmra.mrb[4].mxu1 %vm341_vm1, %v330_v2  ;;  %1217 = vmatmul.mubr.msk.bf16.vlgmr.msra.gmra.mrb[4].mxu0 %vm341_vm1, %v330_v2 }
  0x89   : > { %1209 = vmatpush3.bf16.msra.mxu1 %v1323_v6  ;;  %1210 = vmatprep.mubr.msk.bf16.mxu1 %vm1502_vm0, %v1501_v0  ;;  %v871_v6 = vld [vmem:[%s1730_s15 + $0x10] sm:$0xff]  ;;  %p1421_p12 = pneg %p1420_p5 }
  0x8a   : > { %1220 = vmatprep.subr.bf16.mxu1 %v1501_v0  ;;  %1227 = vmatpush3.bf16.msra.mxu0 %v1328_v7  ;;  %v869_v7 = vld [vmem:[%s1730_s15] sm:$0xff] }
  0x8b   : > { %1228 = vmatprep.mubr.msk.bf16.mxu0 %vm1502_vm0, %v1501_v0  ;;  %1238 = vmatprep.subr.bf16.mxu0 %v1329_v10 }
  0x8c   : > { %930 = vperm.xlu1 %1320, %v1156_v14   ;;  %922 = vperm.xlu0 %1319, %v1154_v15  }
  0x90   : > { %1211 = vmatmul.mubr.msk.bf16.vlgmr.msra.gmra.mrb[8].mxu1 %vm341_vm1, %v330_v2  ;;  %1229 = vmatmul.mubr.msk.bf16.vlgmr.msra.gmra.mrb[8].mxu0 %vm341_vm1, %v330_v2 }
  0x91   : > { %1221 = vmatpush3.bf16.msra.mxu1 %v1325_v8  ;;  %1222 = vmatprep.mubr.msk.bf16.mxu1 %vm1502_vm0, %v1501_v0 }
  0x92   : > { %1232 = vmatprep.subr.bf16.mxu1 %v1501_v0  ;;  %1239 = vmatpush3.bf16.msra.mxu0 %v1329_v10 }
  0x93   : > { %938 = vperm.xlu1 %1320, %v1158_v16   ;;  %934 = vperm.xlu0 %1319, %v1157_v17  }
  0x97   : > { %946 = vperm.xlu1 %1320, %v1160_v18   ;;  %942 = vperm.xlu0 %1319, %v1159_v19  }
  0x98   : > { %1223 = vmatmul.mubr.msk.bf16.vlgmr.msra.gmra.mrb[12].mxu1 %vm341_vm1, %v330_v2 }
  0x99   : > { %1233 = vmatpush3.bf16.msra.mxu1 %v1327_v9  ;;  %1234 = vmatprep.mubr.msk.bf16.mxu1 %vm1502_vm0, %v1501_v0  ;;  %v872_v9 = vld [vmem:[%s1730_s15 + $0x18] sm:$0xff] }
  0xa0   : > { %1235 = vmatmul.mubr.msk.bf16.vlgmr.msra.gmra.mrb[16].mxu1 %vm341_vm1, %v330_v2 }
 0x103   : > { %v927_v4 = vpop.permute.xlu1 %926  ;;  %v919_v5 = vpop.permute.xlu0 %918 }
 0x104   : > { %v951_v10 = vmul.f32 %v927_v4, %v871_v6  ;;  %v949_v14 = vmul.f32 %v919_v5, %v869_v7 }
 0x10b   : > { %v931_v16 = vpop.permute.xlu1 %930 }
 0x10c   : > { %v952_v19 = vmul.f32 %v931_v16, %v872_v9 }
 0x153   : > { %v379_v20 = vpop.f32.mrb[0].mxu1  ;;  %v486_v25 = vpop.f32.mrb[0].mxu0 }
 0x154   : > { %v385_v21 = vpack.c.bf16 %v379_v20, %v379_v20  ;;  %v1194_v22 = vpop.f32.mrb[1].mxu1  ;;  %v492_v26 = vpack.c.bf16 %v486_v25, %v486_v25  ;;  %v1206_v27 = vpop.f32.mrb[1].mxu0 }
 0x155   : > { %v382_v23 = vpop.f32.mrb[2].mxu1  ;;  %v489_v28 = vpop.f32.mrb[2].mxu0 }
 0x156   : > { %387 = vst.msk [vmem:[#allocation2] sm:$0xf] %vm386_vm2, %v385_v21  ;;  %v1195_v24 = vpop.f32.mrb[3].mxu1  ;;  %493 = vst.msk [vmem:[#allocation2 + $0x8] sm:$0xf] %vm386_vm2, %v492_v26  ;;  %v1207_v30 = vpop.f32.mrb[3].mxu0 }
 0x157   : > { %v923_v20 = vpop.permute.xlu0 %922 }
 0x158   : > { %v950_v24 = vmul.f32 %v923_v20, %v870_v13 }
 0x15b   : > { %v431_v29 = vpop.f32.mrb[4].mxu1  ;;  %v591_v36 = vpop.f32.mrb[4].mxu0 }
 0x15c   : > { %v437_v31 = vpack.c.bf16 %v431_v29, %v431_v29  ;;  %v1200_v32 = vpop.f32.mrb[5].mxu1  ;;  %v597_v37 = vpack.c.bf16 %v591_v36, %v591_v36  ;;  %v1218_v38 = vpop.f32.mrb[5].mxu0 }
 0x15d   : > { %v434_v33 = vpop.f32.mrb[6].mxu1  ;;  %v594_v39 = vpop.f32.mrb[6].mxu0 }
 0x15e   : > { %v439_v34 = vrot.slane %v437_v31, 4  ;;  %v1201_v35 = vpop.f32.mrb[7].mxu1  ;;  %598 = vst.msk [vmem:[#allocation2 + $0x10] sm:$0xf] %vm386_vm2, %v597_v37  ;;  %v1219_v41 = vpop.f32.mrb[7].mxu0  ;;  %v873_v37 = vld [vmem:[%s1730_s15 + $0x20] sm:$0xff] }
 0x15f   : > { %v935_v32 = vpop.permute.xlu0 %934  ;;  %v939_v33 = vpop.permute.xlu1 %938 }
 0x160   : > { %442 = vst.msk [vmem:[#allocation2] sm:$0xf0] %vm441_vm3, %v439_v34  ;;  %v875_v34 = vld [vmem:[%s1730_s15 + $0x30] sm:$0xff] }
 0x163   : > { %v537_v40 = vpop.f32.mrb[8].mxu1  ;;  %v696_v48 = vpop.f32.mrb[8].mxu0 }
 0x164   : > { %v543_v42 = vpack.c.bf16 %v537_v40, %v537_v40  ;;  %v1212_v43 = vpop.f32.mrb[9].mxu1  ;;  %v702_v49 = vpack.c.bf16 %v696_v48, %v696_v48  ;;  %v1230_v50 = vpop.f32.mrb[9].mxu0  ;;  %v876_v40 = vld [vmem:[%s1730_s15 + $0x38] sm:$0xff] }
 0x165   : > { %v540_v44 = vpop.f32.mrb[10].mxu1  ;;  %v699_v51 = vpop.f32.mrb[10].mxu0 }
 0x166   : > { %v545_v45 = vrot.slane %v543_v42, 4  ;;  %v1213_v46 = vpop.f32.mrb[11].mxu1  ;;  %703 = vst.msk [vmem:[#allocation2 + $0x18] sm:$0xf] %vm386_vm2, %v702_v49  ;;  %v1231_v53 = vpop.f32.mrb[11].mxu0  ;;  %v874_v44 = vld [vmem:[%s1730_s15 + $0x28] sm:$0xff]  ;;  %v953_v49 = vmul.f32 %v935_v32, %v873_v37 }
 0x167   : > { %v758_v47 = vld [vmem:[#allocation2] sm:$0xff]  ;;  %v943_v35 = vpop.permute.xlu0 %942  ;;  %v947_v41 = vpop.permute.xlu1 %946  ;;  %s1422_s15 = sshll.u32 %s1504_s13, 4  ;;  %s1423_s15 = int_to_ptr.vmem [resolvable:$false] %s1422_s15 }
 0x168   : > { %547 = vst.msk [vmem:[#allocation2 + $0x8] sm:$0xf0] %vm441_vm3, %v545_v45  ;;  %1240 = vmatprep.mubr.msk.bf16.mxu0 %vm341_vm1, %v758_v47  ;;  %v955_v45 = vmul.f32 %v943_v35, %v875_v34  ;;  %s1424_s7 = scalar_lea.vmem %s1423_s15, 2048  ;;  %p1425_p9 = scmp.lt.s32.totalorder %s1801_s30, %s1423_s15 }
 0x169   : > { %p1426_p1 = scmp.lt.s32.totalorder %s1424_s7, %s1418_s14 }
 0x16b   : > { %v642_v52 = vpop.f32.mrb[12].mxu1  ;;  %p1427_p4 = por %p1426_p1, %p1425_p9 }
 0x16c   : > { %v648_v54 = vpack.c.bf16 %v642_v52, %v642_v52  ;;  %v1224_v55 = vpop.f32.mrb[13].mxu1  ;;  %v956_v52 = vmul.f32 %v947_v41, %v876_v40 }
 0x16d   : > { %v645_v56 = vpop.f32.mrb[14].mxu1  ;;  %v954_v55 = vmul.f32 %v939_v33, %v874_v44  ;;  %p1428_p10 = pnand %p1427_p4, %p1421_p12 }
 0x16e   : > { %v650_v57 = vrot.slane %v648_v54, 4  ;;  %v1225_v58 = vpop.f32.mrb[15].mxu1 }
 0x16f   : > { %v759_v59 = vld [vmem:[#allocation2 + $0x8] sm:$0xff] }
 0x170   : > { %652 = vst.msk [vmem:[#allocation2 + $0x10] sm:$0xf0] %vm441_vm3, %v650_v57  ;;  %1241 = vmatmul.mubr.msk.bf16.vlgmr.msra.gmra.mrb[12].mxu0 %vm341_vm1, %v759_v59 }
 0x173   : > { %v747_v60 = vpop.f32.mrb[16].mxu1 }
 0x174   : > { %v753_v61 = vpack.c.bf16 %v747_v60, %v747_v60  ;;  %v1236_v62 = vpop.f32.mrb[17].mxu1 }
 0x175   : > { %v750_v63 = vpop.f32.mrb[18].mxu1 }
 0x176   : > { %v755_v0 = vrot.slane %v753_v61, 4  ;;  %v1237_v1 = vpop.f32.mrb[19].mxu1 }
 0x177   : > { %v760_v2 = vld [vmem:[#allocation2 + $0x10] sm:$0xff] }
 0x178   : > { %757 = vst.msk [vmem:[#allocation2 + $0x18] sm:$0xf0] %vm441_vm3, %v755_v0  ;;  %1244 = vmatprep.mubr.msk.bf16.mxu0 %vm341_vm1, %v760_v2 }
 0x17f   : > { %v761_v3 = vld [vmem:[#allocation2 + $0x18] sm:$0xff] }
 0x180   : > { %1245 = vmatmul.mubr.msk.bf16.gmra.mrb[16].mxu0 %vm341_vm1, %v761_v3 }
 0x243   : > { %v1242_v8 = vpop.f32.mrb[12].mxu0 }
 0x244   : > { %v847_v11 = vmax.f32 %v1242_v8, 0.0  ;;  %v814_v12 = vpop.f32.mrb[13].mxu0 }
 0x245   : > { %v845_v15 = vmax.f32 %v814_v12, 0.0  ;;  %v1243_v17 = vpop.f32.mrb[14].mxu0 }
 0x246   : > { %v855_v18 = vmin.f32 %v847_v11, 1.0  ;;  %v848_v21 = vmax.f32 %v1243_v17, 0.0  ;;  %v817_v22 = vpop.f32.mrb[15].mxu0 }
 0x247   : > { %v853_v23 = vmin.f32 %v845_v15, 1.0  ;;  %v846_v25 = vmax.f32 %v817_v22, 0.0 }
 0x248   : > { %v959_v26 = vadd.f32 %v951_v10, %v855_v18  ;;  %v856_v27 = vmin.f32 %v848_v21, 1.0 }
 0x249   : > { %v957_v28 = vadd.f32 %v949_v14, %v853_v23  ;;  %v854_v29 = vmin.f32 %v846_v25, 1.0 }
 0x24a   : > { %968 = vst.msk [vmem:[%s1778_s4 + $0x10] sm:$0xff] %vm965_vm4, %v959_v26  ;;  %v960_v30 = vadd.f32 %v952_v19, %v856_v27 }
 0x24b   : > { %966 = vst.msk [vmem:[%s1778_s4] sm:$0xff] %vm965_vm4, %v957_v28  ;;  %v958_v31 = vadd.f32 %v950_v24, %v854_v29 }
 0x24c   : > { %969 = vst.msk [vmem:[%s1778_s4 + $0x18] sm:$0xff] %vm965_vm4, %v960_v30 }
 0x24d   : > { %967 = vst.msk [vmem:[%s1778_s4 + $0x8] sm:$0xff] %vm965_vm4, %v958_v31 }
 0x253   : > { %v1246_v36 = vpop.f32.mrb[16].mxu0 }
 0x254   : > { %v851_v38 = vmax.f32 %v1246_v36, 0.0  ;;  %v830_v39 = vpop.f32.mrb[17].mxu0 }
 0x255   : > { %v849_v42 = vmax.f32 %v830_v39, 0.0  ;;  %v1247_v43 = vpop.f32.mrb[18].mxu0 }
 0x256   : > { %v859_v46 = vmin.f32 %v851_v38, 1.0  ;;  %v852_v47 = vmax.f32 %v1247_v43, 0.0  ;;  %v833_v48 = vpop.f32.mrb[19].mxu0 }
 0x257   : > { %v857_v50 = vmin.f32 %v849_v42, 1.0  ;;  %v850_v51 = vmax.f32 %v833_v48, 0.0 }
 0x258   : > { %v963_v53 = vadd.f32 %v955_v45, %v859_v46  ;;  %v860_v54 = vmin.f32 %v852_v47, 1.0 }
 0x259   : > { %v961_v56 = vadd.f32 %v953_v49, %v857_v50  ;;  %v858_v57 = vmin.f32 %v850_v51, 1.0 }
 0x25a   : > { %972 = vst.msk [vmem:[%s1778_s4 + $0x30] sm:$0xff] %vm965_vm4, %v963_v53  ;;  %v964_v58 = vadd.f32 %v956_v52, %v860_v54 }
 0x25b   : > { %970 = vst.msk [vmem:[%s1778_s4 + $0x20] sm:$0xff] %vm965_vm4, %v961_v56  ;;  %v962_v59 = vadd.f32 %v954_v55, %v858_v57 }
 0x25c   : > { %973 = vst.msk [vmem:[%s1778_s4 + $0x38] sm:$0xff] %vm965_vm4, %v964_v58 }
 0x25d   : > { %971 = vst.msk [vmem:[%s1778_s4 + $0x28] sm:$0xff] %vm965_vm4, %v962_v59 }
 0x25e   : > { %1431 = shalt.err (!%p1428_p10)
}
 0x25f   : > { %s1432_s26 = scalar_lea.hbm %s1799_s8, 1024  ;;  %s1436_s17 = scalar_lea.hbm %s1855_s5, 4096 }
 0x260   : > { %p1433_p8 = scmp.ne.s32.totalorder %s1799_s8, %s1432_s26  ;;  %p1437_p0 = scmp.lt.u32.totalorder %s1799_s8, %s1855_s5 }
 0x261   : > { %p1438_p3 = scmp.lt.u32.totalorder %s1436_s17, %s1432_s26  ;;  %p1440_p11 = scmp.lt.u32.totalorder %s1432_s26, %s1799_s8 }
 0x262   : > { %p1434_p7 = pnand %p1433_p8, %p1874_p2 }
 0x263   : > { %p1439_p6 = por %p1438_p3, %p1437_p0 }
 0x264   : > { %p1435_p13 = pneg %p1434_p7 }
 0x265   : > { %p1441_p5 = por %p1440_p11, %p1439_p6 }
 0x267   : > { %p1442_p12 = pnand %p1441_p5, %p1435_p13 }
 0x269   : > { %1445 = shalt.err (!%p1442_p12)
}
 0x26a   : > { %s1505_s0 = smov 128   ;;  %s1506_s4 = smov 8  }
 0x26b   : > { %1256 = dma.vmem_to_hbm [thread:$0]  (%p1874_p2), %s1801_s30, 1024, %s1799_s8, %s975_s6, %s1505_s0, %s1505_s0, %s1506_s4  }
 0x26c PF: > { %p1276_p9 = scmp.ge.s32.totalorder %s1492_s21, 2  ;;  %s1003_s12 = sand.u32 1, %s1480_s18  }
 0x26d   : > { %p1875_p1 = scmp.ne.s32.totalorder %s1866_s11, 0  ;;  %s1004_s24 = scalar_lea.sflag [#allocation5], %s1003_s12 }
 0x26f   : > { %p1270_p4 = pnand %p1276_p9, %p1875_p1 }
 0x271   : > { %1475 = dma.done.wait (!%p1270_p4), %s1004_s24, 1024  }
 0x272   : > { %1477 = vsyncadd (!%p1270_p4), %s1004_s24, 4294966272  ;;  %p19_p10 = scmp.ge.s32.totalorder %s1558_s22, 6   ;;  %s1876_s18 = smov %s1484_s19 }
 0x273   : > { %s1877_s19 = smov %s1488_s20  ;;  %s1878_s20 = smov %s1568_s25 }
 0x274   : > { %s1879_s21 = smov %s1558_s22  ;;  %21 = sbr.rel (!%p19_p10) target bundleno = 9 (0x9), region = 113 }
 0x27b   :  { %1009 = vsyncpa [#allocation4], 1 }
 0x27c   :  { %1011 = vsyncpa [#allocation4 + $0x1], 1 }
 0x27d   :  { %1012 = vsyncpa [#allocation7], 1 }
 0x27e   :  { %1013 = vsyncpa [#allocation5], 1 }
 0x27f   :  { %1015 = vsyncpa [#allocation5 + $0x1], 1 }

</bundles_post_ra>
